<compile_context>
chip_gen: v7x
topology: tpu7x:2x2x1
jax: 0.10.0
libtpu: 0.0.40
codegen_flags: <defaults>
</compile_context>

<pallas_src>
import jax
import jax.numpy as jnp
from jax.experimental import pallas as pl
from jax.experimental.pallas import tpu as pltpu


def _round_up(n: int, m: int) -> int:
    return ((n + m - 1) // m) * m


def _fs_kernel(x_ref, w_ref, o_ref):
    # (tb, tf) tile of x times the (1, tf) weight slice; batch-axis broadcast
    # happens in-vreg on the VPU. Pure load -> mul -> store.
    o_ref[...] = x_ref[...] * w_ref[...]


def feature_selection_forward(
    x: jax.Array,
    weight: jax.Array,
    *,
    target_tile_bytes: int = 6 * 1024 * 1024,   # ~6 MiB per x tile
    max_feature_tile: int = 4096,                # cap on the feature-tile width (lanes)
) -> jax.Array:
    """x: (..., F), weight: (1, F) -> x * weight (same shape/dtype as x)."""
    orig_shape = x.shape
    F = orig_shape[-1]
    assert weight.shape == (1, F), f"weight must be (1, {F}), got {weight.shape}"

    # Flatten leading dims into one batch axis (row-major, like PyTorch Linear inputs).
    x2 = x.reshape(-1, F)
    B = x2.shape[0]
    w = weight.astype(x.dtype)

    itemsize = jnp.dtype(x.dtype).itemsize
    sublane = 8 * max(1, 4 // itemsize)          # 8 f32 / 16 bf16 / 32 int8

    # Feature tile: take the whole (128-rounded) feature axis if it fits the cap,
    # otherwise tile it in 128-multiples. No array padding -- edge blocks are
    # partial and masked by Pallas.
    Fp = _round_up(F, 128)
    tf_eff = Fp if Fp <= max_feature_tile else max_feature_tile
    tf_eff = _round_up(tf_eff, 128)

    # Batch tile: sized from the byte target, sublane-aligned, clamped to B.
    tb_eff = max(sublane, (target_tile_bytes // (tf_eff * itemsize)) // sublane * sublane)
    tb_eff = min(tb_eff, _round_up(B, sublane))
    # Megacore balance (v7x: 2 TCs share the "parallel" grid): keep >= 2 batch
    # blocks whenever B is large enough to split.
    if B > sublane:
        tb_eff = min(tb_eff, _round_up(pl.cdiv(B, 2), sublane))

    grid = (pl.cdiv(B, tb_eff), pl.cdiv(F, tf_eff))

    # VMEM limit from the actual footprint: double-buffered x tile + out tile
    # + double-buffered weight slice + slack.
    footprint = 2 * 2 * tb_eff * tf_eff * itemsize + 2 * 1 * tf_eff * itemsize
    vmem_limit = max(footprint + 2 * 1024 * 1024, 8 * 1024 * 1024)

    cost = pl.CostEstimate(
        flops=B * F,
        transcendentals=0,
        bytes_accessed=(2 * B * F + F) * itemsize,   # read x + write out + read weight
    )

    out = pl.pallas_call(
        _fs_kernel,
        out_shape=jax.ShapeDtypeStruct((B, F), x.dtype),
        grid_spec=pltpu.PrefetchScalarGridSpec(
            num_scalar_prefetch=0,
            grid=grid,
            in_specs=[
                pl.BlockSpec((tb_eff, tf_eff), lambda i, j: (i, j)),  # x tile
                pl.BlockSpec((1, tf_eff), lambda i, j: (0, j)),       # weight slice (resident when nf == 1)
            ],
            out_specs=pl.BlockSpec((tb_eff, tf_eff), lambda i, j: (i, j)),
        ),
        compiler_params=pltpu.CompilerParams(
            dimension_semantics=("parallel", "parallel"),
            vmem_limit_bytes=vmem_limit,
        ),
        cost_estimate=cost,
    )(x2, w)

    return out.reshape(orig_shape)


# get_regularization() is a scalar host-side expression, not part of forward();
# provided as plain JAX for completeness (no kernel needed).
def feature_selection_regularization(weight: jax.Array, reg_lambda: float = 1.0) -> jax.Array:
    return reg_lambda * jnp.abs(jnp.sum(weight) - 1.0)


if __name__ == "__main__":
    key = jax.random.PRNGKey(0)
    k1, k2, k3 = jax.random.split(key, 3)

    # --- Check 1: module-shaped input, default init weight == 1.0 -------------
    B, F = 37, 200  # deliberately not tile-aligned to exercise edge-block masking
    x = jax.random.normal(k1, (B, F), dtype=jnp.float32)
    weight_ones = jnp.ones((1, F), dtype=jnp.float32)  # nn.init.constant_(w, 1.0)

    out = jax.block_until_ready(feature_selection_forward(x, weight_ones))
    ref = x * weight_ones
    assert out.shape == (B, F)
    assert jnp.allclose(out, ref, atol=1e-6, rtol=1e-6)

    # --- Check 2: non-trivial weight + 3-D input (leading dims flattened) -----
    B2, S2, F2 = 2, 8, 96
    x3 = jax.random.normal(k2, (B2, S2, F2), dtype=jnp.float32)
    w3 = jax.random.normal(k3, (1, F2), dtype=jnp.float32)

    out3 = jax.block_until_ready(feature_selection_forward(x3, w3))
    ref3 = x3 * w3
    assert out3.shape == (B2, S2, F2)
    assert jnp.allclose(out3, ref3, atol=1e-6, rtol=1e-6)

    # Regularization (scalar, host-side)
    reg = jax.block_until_ready(feature_selection_regularization(weight_ones))
    assert jnp.allclose(reg, jnp.abs(jnp.sum(weight_ones) - 1.0))

    print("KERNEL_OK")
</pallas_src>

<mosaic_0001>
module attributes {stable_mosaic.version = 11 : i64} {
  func.func @_fs_kernel(%arg0: i32, %arg1: i32, %arg2: memref<24x256xf32, #tpu.memory_space<vmem>>, %arg3: memref<1x256xf32, #tpu.memory_space<vmem>>, %arg4: memref<24x256xf32, #tpu.memory_space<vmem>>) attributes {dimension_semantics = [#tpu.dimension_semantics<parallel>, #tpu.dimension_semantics<parallel>], iteration_bounds = array<i64: 2, 1>, scalar_prefetch = 0 : i64, scratch_operands = 0 : i64, tpu.core_type = #tpu.core_type<tc>, window_params = [{transform_indices = @transform_0, window_bounds = array<i64: 24, 256>}, {transform_indices = @transform_1, window_bounds = array<i64: 1, 256>}, {transform_indices = @transform_2, window_bounds = array<i64: 24, 256>}]} {
    %c0 = arith.constant 0 : index
    %c0_0 = arith.constant 0 : index
    %0 = vector.load %arg2[%c0, %c0_0] : memref<24x256xf32, #tpu.memory_space<vmem>>, vector<24x256xf32>
    %c0_1 = arith.constant 0 : index
    %c0_2 = arith.constant 0 : index
    %1 = vector.load %arg3[%c0_1, %c0_2] : memref<1x256xf32, #tpu.memory_space<vmem>>, vector<1x256xf32>
    %2 = vector.broadcast %1 : vector<1x256xf32> to vector<24x256xf32>
    %3 = arith.mulf %0, %2 : vector<24x256xf32>
    %c0_3 = arith.constant 0 : index
    %c0_4 = arith.constant 0 : index
    %4 = vector.load %arg4[%c0_3, %c0_4] : memref<24x256xf32, #tpu.memory_space<vmem>>, vector<24x256xf32>
    tpu.vector_store %arg4[%c0_3, %c0_4], %3 {strides = array<i32>} : memref<24x256xf32, #tpu.memory_space<vmem>>, vector<24x256xf32>,
    return
  }
  func.func @transform_0(%arg0: i32, %arg1: i32) -> (i32, i32) {
    %c0_i32 = arith.constant 0 : i32
    return %arg0, %arg1 : i32, i32
  }
  func.func @transform_1(%arg0: i32, %arg1: i32) -> (i32, i32) {
    %c0_i32 = arith.constant 0 : i32
    %c0_i32_0 = arith.constant 0 : i32
    return %c0_i32, %arg1 : i32, i32
  }
  func.func @transform_2(%arg0: i32, %arg1: i32) -> (i32, i32) {
    %c0_i32 = arith.constant 0 : i32
    return %arg0, %arg1 : i32, i32
  }
}

</mosaic_0001>

<bundles_post_ra>
// kernel: tpu_custom_call.1
= control target key start
LH: loop header
LB: loop body
LE: loop exit
PB: predicated region body
PF: predicated region fallthrough
CT: control target
= control target key end

     0   :  { %7 = vsyncpa [#allocation3], 0  ;;  %s782_s0 = inlined_call_operand.hbm [shape: f32[37,200], index: 0, kind: input, shape index: {}]   ;;  %s783_s1 = inlined_call_operand.vmem [shape: f32[1,200], index: 1, kind: input, shape index: {}]   ;;  %s784_s2 = inlined_call_operand.hbm [shape: f32[37,200], index: 2, kind: output, shape index: {}]  }
   0x1   :  { %9 = vsyncpa [#allocation3 + $0x1], 0 }
   0x2   :  { %10 = vsyncpa [#allocation4], 0 }
   0x3   :  { %12 = vsyncpa [#allocation4 + $0x1], 0  ;;  %s598_s9 = smov 0   ;;  %s600_s10 = smov 0  }
   0x4   :  { %s602_s11 = smov 0   ;;  %s604_s12 = smov 0  }
   0x5   :  { %s606_s13 = smov 0   ;;  %s608_s14 = smov 0  }
   0x6 LB: > { %s374_s15 = sadd.s32 4294967295, %s575_s14   ;;  %s375_s16 = sadd.s32 4294967294, %s575_s14   ;;  %s575_s14 = sphi %s608_s14, %s18_s14   ;;  %s571_s13 = sphi %s606_s13, %s795_s13   ;;  %s567_s12 = sphi %s604_s12, %s794_s12   ;;  %s563_s11 = sphi %s602_s11, %s793_s11   ;;  %s559_s10 = sphi %s600_s10, %s792_s10   ;;  %s555_s9 = sphi %s598_s9, %s791_s9  }
   0x7   : > { %s30_s17 = sadd.s32 1, %s571_s13  ;;  %s39_s18 = sadd.s32 1, %s563_s11 }
   0x8   : > { %p32_p0 = scmp.ge.s32.totalorder %s30_s17, 2  ;;  %p46_p1 = scmp.ne.s32.totalorder %s563_s11, %s559_s10 }
   0x9   : > { %p47_p2 = scmp.eq.s32.totalorder %s575_s14, 0  ;;  %p52_p3 = scmp.ne.s32.totalorder %s559_s10, %s555_s9 }
   0xa   : > { %s797_s17 = smov (%p32_p0, %s30_s17), 0  ;;  %p53_p5 = scmp.eq.s32.totalorder %s374_s15, 0 }
   0xb   : > { %p48_p4 = por %p47_p2, %p46_p1  ;;  %s34_s19 = ssub.s32 %s571_s13, %s797_s17 }
   0xc   : > { %p104_p6 = scmp.eq.s32.totalorder %s374_s15, 1  ;;  %p37_p7 = scmp.eq.s32.totalorder %s34_s19, 0 }
   0xd   : > { %p641_p8 = por %p53_p5, %p52_p3  ;;  %p110_p10 = scmp.eq.s32.totalorder %s375_s16, 1 }
   0xe   : > { %p645_p9 = por %p104_p6, %p46_p1  ;;  %p785_p12 = scmp.ge.s32.totalorder %s575_s14, 2 }
   0xf   : > { %s650_s22 = scalar_select %p37_p7, %s563_s11, %s39_s18  }
  0x10   : > { %p652_p11 = por %p110_p10, %p52_p3  ;;  %134 = sbr.rel (%p785_p12) target bundleno = 58 (0x3a), region = 20 }
  0x12   : > { %s788_s23 = scalar_select %p652_p11, 1, 0 }
  0x17   : > { %137 = sbr.rel (!%p48_p4) target bundleno = 58 (0x3a), region = 24  ;;  %s138_s24 = sand.u32 (%p48_p4), 1, %s563_s11  }
  0x18   : > { %s143_s25 = smul.u32 (%p48_p4), 3, %s571_s13  ;;  %s664_s30 = scalar_lea.sflag (%p48_p4), [#allocation3], %s138_s24 }
  0x19   : > { %s404_s26 = smul.u32 (%p48_p4), 48, %s138_s24 }
  0x1a   : > { %s145_s27 = ssub.s32 (%p48_p4), 5, %s143_s25 }
  0x1b   : > { %p146_p13 = scmp.lt.s32.totalorder (%p48_p4), %s145_s27, 3  ;;  %s142_s3 = scalar_lea.vmem (%p48_p4), [#allocation2], %s404_s26 }
  0x1e   : > { %s799_s27 = smov (!%p146_p13, %s145_s27), 3 }
  0x1f   : > { %s661_s28 = sshll.u32 %s799_s27, 8 }
  0x20   : > { %s151_s29 = ssub.s32 768, %s661_s28 }
  0x21   : > { %152 = vsyncadd %s664_s30, %s151_s29  ;;  %p381_p0 = scmp.ne.s32.totalorder %s661_s28, 0  ;;  %s402_s4 = smul.u32 768, %s571_s13 }
  0x22   : > { %s159_s5 = sshll.u32 %s142_s3, 4  ;;  %s469_s19 = scalar_lea.hbm %s782_s0, 1280  ;;  %s674_s5 = int_to_ptr.vmem [resolvable:$true] %s159_s5 }
  0x23   : > { %s672_s8 = scalar_lea.hbm %s782_s0, %s402_s4 }
  0x24   : > { %s465_s15 = scalar_lea.hbm %s672_s8, %s661_s28  ;;  %p470_p4 = scmp.lt.u32.totalorder %s672_s8, %s782_s0 }
  0x25   : > { %p466_p1 = scmp.ne.s32.totalorder %s672_s8, %s465_s15  ;;  %p471_p5 = scmp.lt.u32.totalorder %s469_s19, %s465_s15 }
  0x26   : > { %p473_p7 = scmp.lt.u32.totalorder %s465_s15, %s672_s8 }
  0x27   : > { %p467_p2 = pnand %p466_p1, %p381_p0  ;;  %p472_p6 = por %p471_p5, %p470_p4 }
  0x29   : > { %p468_p3 = pneg %p467_p2  ;;  %p474_p10 = por %p473_p7, %p472_p6 }
  0x2b   : > { %p475_p13 = pnand %p474_p10, %p468_p3 }
  0x2d   : > { %478 = shalt.err (!%p475_p13)
}
  0x2e   : > { %s479_s26 = scalar_lea.vmem %s674_s5, %s661_s28  ;;  %s577_s27 = smov [#allocation2]  }
  0x2f   : > { %p480_p1 = scmp.ne.s32.totalorder %s674_s5, %s479_s26  ;;  %s483_s29 = sshll.u32 %s577_s27, 4  ;;  %s484_s29 = int_to_ptr.vmem [resolvable:$false] %s483_s29 }
  0x30   : > { %s485_s3 = scalar_lea.vmem %s484_s29, 1536  ;;  %p486_p11 = scmp.lt.s32.totalorder %s674_s5, %s484_s29 }
  0x31   : > { %p481_p2 = pnand %p480_p1, %p381_p0  ;;  %p487_p4 = scmp.lt.s32.totalorder %s485_s3, %s479_s26 }
  0x33   : > { %p482_p12 = pneg %p481_p2  ;;  %p488_p5 = por %p487_p4, %p486_p11 }
  0x35   : > { %p489_p6 = pnand %p488_p5, %p482_p12 }
  0x37   : > { %492 = shalt.err (!%p489_p6)
}
  0x38   : > { %s578_s4 = smov 256   ;;  %s579_s6 = smov 16  }
  0x39   : > { %165 = dma.hbm_to_vmem [thread:$0]  (%p381_p0), %s672_s8, %s661_s28, %s674_s5, %s664_s30, %s578_s4, %s578_s4, %s579_s6  }
  0x3a PF: > { %p386_p3 = scmp.ge.s32.totalorder %s575_s14, 1  ;;  %p167_p7 = scmp.lt.s32.totalorder %s575_s14, 3 }
  0x3c   : > { %p168_p10 = pnand %p386_p3, %p167_p7 }
  0x3d   : > { %s704_s7 = sand.u32 (!%p168_p10), 1, %s559_s10  }
  0x3e   : > { %171 = sbr.rel (%p168_p10) target bundleno = 111 (0x6f), region = 28  ;;  %s174_s16 = scalar_lea.sflag (!%p168_p10), [#allocation3], %s704_s7 }
  0x3f   : > { %s405_s15 = smul.u32 (!%p168_p10), 48, %s704_s7 }
  0x41   : > { %s177_s18 = scalar_lea.vmem (!%p168_p10), [#allocation2], %s405_s15 }
  0x45   : > { %546 = dma.done.wait (%p641_p8), %s174_s16, 768  }
  0x46   : > { %548 = vsyncadd (%p641_p8), %s174_s16, 4294966528  ;;  %v229_v0 = vlaneseq  ;;  %v221_v4 = vld [vmem:[%s177_s18] sm:$0xff]  ;;  %v222_v6 = vld [vmem:[%s177_s18 + $0x8] sm:$0xff]  ;;  %s201_s20 = scalar_lea.vmem [#allocation5], %s405_s15  ;;  %s252_s5 = scalar_lea.sflag [#allocation4], %s704_s7 }
  0x47   : > { %v227_v5 = vld [vmem:[%s783_s1] sm:$0x3]  ;;  %v224_v10 = vld [vmem:[%s177_s18 + $0x18] sm:$0xff]  ;;  %v226_v12 = vld [vmem:[%s177_s18 + $0x28] sm:$0xff]  ;;  %s259_s8 = smul.u32 (%p645_p9), 3, %s567_s12 }
  0x48   : > { %v230_v1 = vshrl.u32 %v229_v0, 7  ;;  %v223_v9 = vld [vmem:[%s177_s18 + $0x10] sm:$0xff]  ;;  %v225_v11 = vld [vmem:[%s177_s18 + $0x20] sm:$0xff] }
  0x49   : > { %s261_s19 = ssub.s32 (%p645_p9), 5, %s259_s8 }
  0x4a   : > { %v231_v2 = vsub.s32 0, %v230_v1  ;;  %v235_v3 = vsub.s32 1, %v230_v1  ;;  %p262_p8 = scmp.lt.s32.totalorder (%p645_p9), %s261_s19, 3 }
  0x4c   : > { %v232_v7 = vrot.slane %v227_v5, %v231_v2  ;;  %v236_v8 = vrot.slane %v227_v5, %v235_v3  ;;  %258 = sbr.rel (!%p645_p9) target bundleno = 111 (0x6f), region = 36 }
  0x4e   : > { %v239_v13 = vmul.f32 %v232_v7, %v221_v4  ;;  %v240_v14 = vmul.f32 %v236_v8, %v222_v6  ;;  %v241_v15 = vmul.f32 %v232_v7, %v223_v9  ;;  %v242_v16 = vmul.f32 %v236_v8, %v224_v10 }
  0x4f   : > { %v243_v17 = vmul.f32 %v232_v7, %v225_v11  ;;  %v244_v18 = vmul.f32 %v236_v8, %v226_v12 }
  0x50   : > { %245 = vst [vmem:[%s201_s20] sm:$0xff] %v239_v13  ;;  %246 = vst [vmem:[%s201_s20 + $0x8] sm:$0xff] %v240_v14 }
  0x51   : > { %247 = vst [vmem:[%s201_s20 + $0x10] sm:$0xff] %v241_v15  ;;  %248 = vst [vmem:[%s201_s20 + $0x18] sm:$0xff] %v242_v16 }
  0x52   : > { %249 = vst [vmem:[%s201_s20 + $0x20] sm:$0xff] %v243_v17  ;;  %250 = vst [vmem:[%s201_s20 + $0x28] sm:$0xff] %v244_v18 }
  0x53   : > { %s801_s19 = smov (!%p262_p8, %s261_s19), 3 }
  0x54   : > { %s719_s24 = sshll.u32 %s801_s19, 8 }
  0x55   : > { %s267_s25 = ssub.s32 768, %s719_s24 }
  0x56   : > { %268 = vsyncadd %s252_s5, %s267_s25  ;;  %p389_p11 = scmp.ne.s32.totalorder %s719_s24, 0  ;;  %s403_s26 = smul.u32 768, %s567_s12 }
  0x57   : > { %s275_s21 = sshll.u32 %s201_s20, 4  ;;  %s580_s6 = smov [#allocation5]   ;;  %s731_s21 = int_to_ptr.vmem [resolvable:$true] %s275_s21 }
  0x58   : > { %s729_s3 = scalar_lea.hbm %s784_s2, %s403_s26  ;;  %s493_s4 = scalar_lea.vmem %s731_s21, %s719_s24 }
  0x59   : > { %p494_p9 = scmp.ne.s32.totalorder %s731_s21, %s493_s4  ;;  %s497_s15 = sshll.u32 %s580_s6, 4  ;;  %s498_s15 = int_to_ptr.vmem [resolvable:$false] %s497_s15 }
  0x5a   : > { %s499_s12 = scalar_lea.vmem %s498_s15, 1536  ;;  %p500_p13 = scmp.lt.s32.totalorder %s731_s21, %s498_s15 }
  0x5b   : > { %p495_p12 = pnand %p494_p9, %p389_p11  ;;  %p501_p1 = scmp.lt.s32.totalorder %s499_s12, %s493_s4 }
  0x5d   : > { %p496_p0 = pneg %p495_p12  ;;  %p502_p2 = por %p501_p1, %p500_p13 }
  0x5f   : > { %p503_p4 = pnand %p502_p2, %p496_p0 }
  0x61   : > { %506 = shalt.err (!%p503_p4)
}
  0x62   : > { %s507_s16 = scalar_lea.hbm %s729_s3, %s719_s24  ;;  %s511_s30 = scalar_lea.hbm %s784_s2, 1280 }
  0x63   : > { %p508_p5 = scmp.ne.s32.totalorder %s729_s3, %s507_s16  ;;  %p512_p7 = scmp.lt.u32.totalorder %s729_s3, %s784_s2 }
  0x64   : > { %p513_p10 = scmp.lt.u32.totalorder %s511_s30, %s507_s16  ;;  %p515_p9 = scmp.lt.u32.totalorder %s507_s16, %s729_s3 }
  0x65   : > { %p509_p6 = pnand %p508_p5, %p389_p11 }
  0x66   : > { %p514_p8 = por %p513_p10, %p512_p7 }
  0x67   : > { %p510_p3 = pneg %p509_p6 }
  0x68   : > { %p516_p12 = por %p515_p9, %p514_p8 }
  0x6a   : > { %p517_p0 = pnand %p516_p12, %p510_p3 }
  0x6c   : > { %520 = shalt.err (!%p517_p0)
}
  0x6d   : > { %s581_s19 = smov 256   ;;  %s582_s25 = smov 16  }
  0x6e   : > { %281 = dma.vmem_to_hbm [thread:$0]  (%p389_p11), %s731_s21, %s719_s24, %s729_s3, %s252_s5, %s581_s19, %s581_s19, %s582_s25  }
  0x6f PF: > { %s290_s26 = sand.u32 1, %s555_s9   ;;  %p789_p13 = scmp.ne.s32.totalorder %s788_s23, 0 }
  0x70   : > { %p790_p1 = scmp.ge.s32.totalorder %s575_s14, 2  ;;  %s291_s27 = scalar_lea.sflag [#allocation4], %s290_s26 }
  0x72   : > { %p409_p2 = pnand %p790_p1, %p789_p13 }
  0x74   : > { %550 = dma.done.wait (!%p409_p2), %s291_s27, 768  }
  0x75   : > { %552 = vsyncadd (!%p409_p2), %s291_s27, 4294966528  ;;  %s18_s14 = sadd.s32 1, %s575_s14   ;;  %s791_s9 = smov %s559_s10 }
  0x76   : > { %p15_p4 = scmp.ge.s32.totalorder %s18_s14, 4   ;;  %s792_s10 = smov %s563_s11 }
  0x77   : > { %s793_s11 = smov %s650_s22  ;;  %s794_s12 = smov %s571_s13 }
  0x78   : > { %s795_s13 = smov %s797_s17  ;;  %17 = sbr.rel (!%p15_p4) target bundleno = 6 (0x6), region = 76 }
  0x7f   :  { %296 = vsyncpa [#allocation3], 1 }
  0x80   :  { %298 = vsyncpa [#allocation3 + $0x1], 1 }
  0x81   :  { %299 = vsyncpa [#allocation4], 1 }
  0x82   :  { %301 = vsyncpa [#allocation4 + $0x1], 1 }

</bundles_post_ra>
